<compile_context>
chip_gen: v5e
topology: v5e:2x2
jax: 0.10.0
libtpu: 0.0.40
codegen_flags: <defaults>
</compile_context>

<pallas_src>
import math
import functools

import jax
import jax.numpy as jnp
from jax.experimental import pallas as pl
from jax.experimental.pallas import tpu as pltpu


def _round_up(x, m):
    return ((x + m - 1) // m) * m


def _tpu_generation():
    try:
        kind = jax.devices()[0].device_kind.lower()
    except Exception:
        return "unknown"
    if "7" in kind:
        return "v7x"
    if "v6" in kind:
        return "v6e"
    if "v5e" in kind or "v5 lite" in kind or "v5lite" in kind:
        return "v5e"
    return "unknown"


def _vmem_capacity_bytes(gen):
    try:
        cap = int(pltpu.get_tpu_info().vmem_capacity_bytes)
        if cap > 0:
            return cap
    except Exception:
        pass
    return (64 << 20) if gen == "v7x" else (128 << 20)


def _wrapper_kernel(x_ref, wenc_ref, wheadT_ref, bias_ref, o_ref, acc_ref, *,
                    normalize):
    # x_ref:      [TB, TK]     bf16 flattened-image tile
    # wenc_ref:   [TK, Dp]     bf16 encoder-projection tile
    # wheadT_ref: [Dp, Cp]     bf16 head weight (transposed), resident across k
    # bias_ref:   [1,  Cp]     f32 head bias, resident across k
    # o_ref:      [TB, Cp]     f32 logits (written only on last k step)
    # acc_ref:    [TB, Dp]     f32 feature accumulator scratch
    k = pl.program_id(1)

    @pl.when(k == 0)
    def _():
        acc_ref[...] = jnp.zeros_like(acc_ref)

    # Encoder matmul: bf16 operands, f32 accumulation on the MXU.
    acc_ref[...] += jnp.dot(x_ref[...], wenc_ref[...],
                            preferred_element_type=jnp.float32)

    @pl.when(k == pl.num_programs(1) - 1)
    def _():
        feats = acc_ref[...]                       # f32 [TB, Dp]
        if normalize:
            # features / features.norm(dim=-1, keepdim=True)
            # Clamp with a tiny floor so all-zero *padded* rows don't produce
            # NaN (real rows are unaffected; they are far above float32 tiny).
            sq = jnp.sum(feats * feats, axis=-1, keepdims=True)
            sq = jnp.maximum(sq, jnp.float32(1.2e-38))
            feats = feats * jax.lax.rsqrt(sq)      # rsqrt lands on the EUP slot
        # Head matmul in bf16 (accuracy already bf16-limited by the encoder).
        logits = jnp.dot(feats.astype(wheadT_ref.dtype), wheadT_ref[...],
                         preferred_element_type=jnp.float32)
        o_ref[...] = logits + bias_ref[...]


class PallasModelWrapper:
    """Pallas TPU equivalent of ModelWrapper.forward (encode -> normalize -> head)."""

    def __init__(self, w_enc, w_head, b_head, *, normalize=False,
                 tb=None, tk=None):
        self.normalize = bool(normalize)
        if not self.normalize:
            print('normalize skipped.')
        self.gen = _tpu_generation()

        P, D = w_enc.shape
        C = w_head.shape[0]
        self.P, self.D, self.C = P, D, C
        self.D_pad = _round_up(D, 128)
        self.C_pad = _round_up(C, 128)

        # Generation-specific tile targets (roofline-driven).
        if tb is None:
            tb = {"v6e": 2048, "v7x": 512, "v5e": 512}.get(self.gen, 512)
        if tk is None:
            tk = {"v6e": 2048, "v7x": 1024, "v5e": 2048}.get(self.gen, 1024)
        tb = max(8, _round_up(int(tb), 8))
        tk = max(128, min(_round_up(int(tk), 128), _round_up(P, 128)))

        # Generation-aware VMEM budget.
        cap = _vmem_capacity_bytes(self.gen)
        if self.gen == "v7x":
            self.vmem_cap = min(cap - (8 << 20), 52 << 20)
        else:
            self.vmem_cap = min(cap - (16 << 20), 104 << 20)
        self.vmem_cap = max(self.vmem_cap, 16 << 20)

        # Shrink tiles until the (double-buffer-inclusive) footprint fits.
        budget = int(0.9 * self.vmem_cap)
        while self._tile_bytes(tb, tk) > budget:
            if tk > 512:
                tk = max(512, tk // 2)
            elif tb > 128:
                tb = max(128, tb // 2)
            elif tk > 128:
                tk = max(128, tk // 2)
            elif tb > 8:
                tb = max(8, tb // 2)
            else:
                break
        self.tb_max = tb
        self.tk = tk
        self.P_pad = _round_up(P, tk)

        # ---- one-time weight packing (hoisted out of the per-call path) ----
        w_enc_p = jnp.zeros((self.P_pad, self.D_pad), jnp.bfloat16)
        self.w_enc_p = w_enc_p.at[:P, :D].set(jnp.asarray(w_enc, jnp.bfloat16))

        w_head_t = jnp.zeros((self.D_pad, self.C_pad), jnp.bfloat16)
        self.w_head_t = w_head_t.at[:D, :C].set(
            jnp.asarray(w_head, jnp.float32).T.astype(jnp.bfloat16))

        bias2d = jnp.zeros((1, self.C_pad), jnp.float32)
        self.bias2d = bias2d.at[0, :C].set(jnp.asarray(b_head, jnp.float32))

    def _tile_bytes(self, tb, tk):
        return (2 * tb * tk * 2                      # bf16 x tile, 2 buffers
                + 2 * tk * self.D_pad * 2            # bf16 W_enc tile, 2 buffers
                + 2 * self.D_pad * self.C_pad * 2    # bf16 head weight (resident)
                + 2 * self.C_pad * 4                 # f32 bias (resident)
                + 2 * tb * self.C_pad * 4            # f32 logits tile, 2 buffers
                + tb * self.D_pad * 4)               # f32 accumulator scratch

    def __call__(self, images):
        """images: [B, C, H, W] (NCHW). Returns logits [B, num_classes] (f32)."""
        B = images.shape[0]
        P = int(math.prod(images.shape[1:]))
        assert P == self.P, f"flattened input dim {P} != encoder input dim {self.P}"

        B_pad8 = _round_up(B, 8)
        tb = min(self.tb_max, B_pad8)
        if self.gen == "v7x":
            # Keep >= 2 batch tiles so "parallel" can shard across both TCs.
            tb_half = _round_up(-(-B_pad8 // 2), 8)
            if B_pad8 // tb < 2 and tb_half < tb:
                tb = tb_half
        B_pad = _round_up(B_pad8, tb)
        tk = self.tk

        # Per-call plumbing: only the activation cast / reshape / zero-pad.
        x_p = jnp.zeros((B_pad, self.P_pad), jnp.bfloat16)
        x_p = x_p.at[:B, :P].set(images.reshape(B, P).astype(jnp.bfloat16))

        grid = (B_pad // tb, self.P_pad // tk)   # (batch tiles, K tiles) — K last
        vmem_bytes = int(min(self.vmem_cap,
                             max(8 << 20, self._tile_bytes(tb, tk) + (2 << 20))))

        kernel = functools.partial(_wrapper_kernel, normalize=self.normalize)
        D_pad, C_pad = self.D_pad, self.C_pad

        out_padded = pl.pallas_call(
            kernel,
            out_shape=jax.ShapeDtypeStruct((B_pad, C_pad), jnp.float32),
            grid_spec=pltpu.PrefetchScalarGridSpec(
                num_scalar_prefetch=0,
                grid=grid,
                in_specs=[
                    pl.BlockSpec((tb, tk), lambda b, k: (b, k)),        # x tile
                    pl.BlockSpec((tk, D_pad), lambda b, k: (k, 0)),     # W_enc tile
                    pl.BlockSpec((D_pad, C_pad), lambda b, k: (0, 0)),  # head W (resident)
                    pl.BlockSpec((1, C_pad), lambda b, k: (0, 0)),      # head bias (resident)
                ],
                out_specs=pl.BlockSpec((tb, C_pad), lambda b, k: (b, 0)),
                scratch_shapes=[pltpu.VMEM((tb, D_pad), jnp.float32)],
            ),
            compiler_params=pltpu.CompilerParams(
                dimension_semantics=("parallel", "arbitrary"),
                vmem_limit_bytes=vmem_bytes,
            ),
        )(x_p, self.w_enc_p, self.w_head_t, self.bias2d)

        return out_padded[:B, :self.C]


if __name__ == "__main__":
    # Small shapes consistent with the module: batch=2, channels=4, spatial=16,
    # feature_dim=32, num_classes=8.
    B, Cc, H, W = 2, 4, 16, 16
    feature_dim = 32
    num_classes = 8
    P = Cc * H * W

    key = jax.random.PRNGKey(0)
    k_img, k_enc, k_head = jax.random.split(key, 3)

    images = jax.random.normal(k_img, (B, Cc, H, W), dtype=jnp.float32)

    # Stand-in encoder weight (deterministic linear projection for encode_image).
    w_enc = jax.random.normal(k_enc, (P, feature_dim), dtype=jnp.float32) * 0.02

    # classification_head: kaiming_uniform_(a=sqrt(5)) on weight [num_classes, feature_dim]
    # -> uniform(-bound, bound) with bound = 1/sqrt(fan_in) = 1/sqrt(feature_dim).
    bound = 1.0 / math.sqrt(feature_dim)
    w_head = jax.random.uniform(k_head, (num_classes, feature_dim),
                                dtype=jnp.float32, minval=-bound, maxval=bound)
    b_head = jnp.zeros((num_classes,), dtype=jnp.float32)

    model = PallasModelWrapper(w_enc, w_head, b_head, normalize=True)
    logits = model(images)
    jax.block_until_ready(logits)

    # Reference 1: mirror the kernel's bf16-operand / f32-accumulate path (tight).
    feats_bf = jnp.dot(images.reshape(B, P).astype(jnp.bfloat16),
                       w_enc.astype(jnp.bfloat16),
                       preferred_element_type=jnp.float32)
    sq = jnp.sum(feats_bf * feats_bf, axis=-1, keepdims=True)
    feats_n = feats_bf * jax.lax.rsqrt(jnp.maximum(sq, 1.2e-38))
    logits_bf = jnp.dot(feats_n.astype(jnp.bfloat16),
                        w_head.T.astype(jnp.bfloat16),
                        preferred_element_type=jnp.float32) + b_head
    assert jnp.allclose(logits, logits_bf, atol=1e-4, rtol=1e-4), "bf16-ref mismatch"

    # Reference 2: pure-f32 module math (loose tolerance for the bf16 MXU path).
    feats_ref = images.reshape(B, P) @ w_enc
    feats_ref = feats_ref / jnp.linalg.norm(feats_ref, axis=-1, keepdims=True)
    logits_ref = feats_ref @ w_head.T + b_head
    assert jnp.allclose(logits, logits_ref, atol=2e-2, rtol=2e-2), "f32-ref mismatch"

    print("KERNEL_OK")
</pallas_src>

<mosaic_0001>
module attributes {stable_mosaic.version = 11 : i64} {
  func.func @_wrapper_kernel(%arg0: i32, %arg1: i32, %arg2: memref<8x1024xbf16, #tpu.memory_space<vmem>>, %arg3: memref<1024x128xbf16, #tpu.memory_space<vmem>>, %arg4: memref<128x128xbf16, #tpu.memory_space<vmem>>, %arg5: memref<1x128xf32, #tpu.memory_space<vmem>>, %arg6: memref<8x128xf32, #tpu.memory_space<vmem>>, %arg7: memref<8x128xf32, #tpu.memory_space<vmem>>) attributes {dimension_semantics = [#tpu.dimension_semantics<parallel>, #tpu.dimension_semantics<arbitrary>], iteration_bounds = array<i64: 1, 1>, scalar_prefetch = 0 : i64, scratch_operands = 1 : i64, tpu.core_type = #tpu.core_type<tc>, window_params = [{transform_indices = @transform_0, window_bounds = array<i64: 8, 1024>}, {transform_indices = @transform_1, window_bounds = array<i64: 1024, 128>}, {pipeline_mode = #tpu.pipeline_mode<synchronous>, transform_indices = @transform_2, window_bounds = array<i64: 128, 128>}, {pipeline_mode = #tpu.pipeline_mode<synchronous>, transform_indices = @transform_3, window_bounds = array<i64: 1, 128>}, {transform_indices = @transform_4, window_bounds = array<i64: 8, 128>}]} {
    %c0_i32 = arith.constant 0 : i32
    %0 = arith.cmpi eq, %arg1, %c0_i32 : i32
    %1 = arith.extui %0 : i1 to i32
    %c0_i32_0 = arith.constant 0 : i32
    %2 = arith.cmpi ne, %1, %c0_i32_0 : i32
    scf.if %2 {
      %cst_10 = arith.constant 0.000000e+00 : f32
      %12 = vector.broadcast %cst_10 : f32 to vector<8x128xf32>
      %c0_11 = arith.constant 0 : index
      %c0_12 = arith.constant 0 : index
      %13 = vector.load %arg7[%c0_11, %c0_12] : memref<8x128xf32, #tpu.memory_space<vmem>>, vector<8x128xf32>
      tpu.vector_store %arg7[%c0_11, %c0_12], %12 {strides = array<i32>} : memref<8x128xf32, #tpu.memory_space<vmem>>, vector<8x128xf32>,
    } else {
    }
    %c0 = arith.constant 0 : index
    %c0_1 = arith.constant 0 : index
    %3 = vector.load %arg7[%c0, %c0_1] : memref<8x128xf32, #tpu.memory_space<vmem>>, vector<8x128xf32>
    %c0_2 = arith.constant 0 : index
    %c0_3 = arith.constant 0 : index
    %4 = vector.load %arg2[%c0_2, %c0_3] : memref<8x1024xbf16, #tpu.memory_space<vmem>>, vector<8x1024xbf16>
    %c0_4 = arith.constant 0 : index
    %c0_5 = arith.constant 0 : index
    %5 = vector.load %arg3[%c0_4, %c0_5] : memref<1024x128xbf16, #tpu.memory_space<vmem>>, vector<1024x128xbf16>
    %cst = arith.constant dense<0.000000e+00> : vector<8x128xf32>
    %6 = tpu.matmul %4, %5, %cst {dimension_numbers = #tpu.dot_dimension_numbers<[1], [0], [0], [1], [0, 0, 1, 1], [], []>} : vector<8x1024xbf16>, vector<1024x128xbf16>, vector<8x128xf32> -> vector<8x128xf32>
    %7 = arith.addf %3, %6 : vector<8x128xf32>
    %c0_6 = arith.constant 0 : index
    %c0_7 = arith.constant 0 : index
    %8 = vector.load %arg7[%c0_6, %c0_7] : memref<8x128xf32, #tpu.memory_space<vmem>>, vector<8x128xf32>
    tpu.vector_store %arg7[%c0_6, %c0_7], %7 {strides = array<i32>} : memref<8x128xf32, #tpu.memory_space<vmem>>, vector<8x128xf32>,
    %c0_i32_8 = arith.constant 0 : i32
    %9 = arith.cmpi eq, %arg1, %c0_i32_8 : i32
    %10 = arith.extui %9 : i1 to i32
    %c0_i32_9 = arith.constant 0 : i32
    %11 = arith.cmpi ne, %10, %c0_i32_9 : i32
    scf.if %11 {
      %c0_10 = arith.constant 0 : index
      %c0_11 = arith.constant 0 : index
      %12 = vector.load %arg7[%c0_10, %c0_11] : memref<8x128xf32, #tpu.memory_space<vmem>>, vector<8x128xf32>
      %13 = arith.mulf %12, %12 : vector<8x128xf32>
      %cst_12 = arith.constant dense<0.000000e+00> : vector<8xf32>
      %14 = vector.multi_reduction <add>, %13, %cst_12 [1] : vector<8x128xf32> to vector<8xf32>
      %15 = vector.shape_cast %14 : vector<8xf32> to vector<8x1xf32>
      %cst_13 = arith.constant 1.200000e-38 : f32
      %16 = vector.broadcast %cst_13 : f32 to vector<8x1xf32>
      %17 = arith.maximumf %15, %16 : vector<8x1xf32>
      %18 = math.rsqrt %17 : vector<8x1xf32>
      %19 = vector.broadcast %18 : vector<8x1xf32> to vector<8x128xf32>
      %20 = arith.mulf %12, %19 : vector<8x128xf32>
      %21 = arith.truncf %20 : vector<8x128xf32> to vector<8x128xbf16>
      %c0_14 = arith.constant 0 : index
      %c0_15 = arith.constant 0 : index
      %22 = vector.load %arg4[%c0_14, %c0_15] : memref<128x128xbf16, #tpu.memory_space<vmem>>, vector<128x128xbf16>
      %cst_16 = arith.constant dense<0.000000e+00> : vector<8x128xf32>
      %23 = tpu.matmul %21, %22, %cst_16 {dimension_numbers = #tpu.dot_dimension_numbers<[1], [0], [0], [1], [0, 0, 1, 1], [], []>} : vector<8x128xbf16>, vector<128x128xbf16>, vector<8x128xf32> -> vector<8x128xf32>
      %c0_17 = arith.constant 0 : index
      %c0_18 = arith.constant 0 : index
      %24 = vector.load %arg5[%c0_17, %c0_18] : memref<1x128xf32, #tpu.memory_space<vmem>>, vector<1x128xf32>
      %25 = vector.broadcast %24 : vector<1x128xf32> to vector<8x128xf32>
      %26 = arith.addf %23, %25 : vector<8x128xf32>
      %c0_19 = arith.constant 0 : index
      %c0_20 = arith.constant 0 : index
      %27 = vector.load %arg6[%c0_19, %c0_20] : memref<8x128xf32, #tpu.memory_space<vmem>>, vector<8x128xf32>
      tpu.vector_store %arg6[%c0_19, %c0_20], %26 {strides = array<i32>} : memref<8x128xf32, #tpu.memory_space<vmem>>, vector<8x128xf32>,
    } else {
    }
    return
  }
  func.func @transform_0(%arg0: i32, %arg1: i32) -> (i32, i32) {
    %c0_i32 = arith.constant 0 : i32
    return %arg0, %arg1 : i32, i32
  }
  func.func @transform_1(%arg0: i32, %arg1: i32) -> (i32, i32) {
    %c0_i32 = arith.constant 0 : i32
    %c0_i32_0 = arith.constant 0 : i32
    return %arg1, %c0_i32 : i32, i32
  }
  func.func @transform_2(%arg0: i32, %arg1: i32) -> (i32, i32) {
    %c0_i32 = arith.constant 0 : i32
    %c0_i32_0 = arith.constant 0 : i32
    %c0_i32_1 = arith.constant 0 : i32
    return %c0_i32, %c0_i32_0 : i32, i32
  }
  func.func @transform_3(%arg0: i32, %arg1: i32) -> (i32, i32) {
    %c0_i32 = arith.constant 0 : i32
    %c0_i32_0 = arith.constant 0 : i32
    %c0_i32_1 = arith.constant 0 : i32
    return %c0_i32, %c0_i32_0 : i32, i32
  }
  func.func @transform_4(%arg0: i32, %arg1: i32) -> (i32, i32) {
    %c0_i32 = arith.constant 0 : i32
    %c0_i32_0 = arith.constant 0 : i32
    return %arg0, %c0_i32 : i32, i32
  }
}

</mosaic_0001>

<bundles_post_ra>
// kernel: tpu_custom_call.1
= control target key start
LH: loop header
LB: loop body
LE: loop exit
PB: predicated region body
PF: predicated region fallthrough
CT: control target
= control target key end

     0   :  { %9 = vsyncpa [#allocation4], 0  ;;  %s1356_s0 = inlined_call_operand.hbm [shape: bf16[8,1024], index: 0, kind: input, shape index: {}]   ;;  %s1357_s1 = inlined_call_operand.hbm [shape: bf16[1024,128], index: 1, kind: input, shape index: {}]   ;;  %s1358_s2 = inlined_call_operand.hbm [shape: bf16[128,128], index: 2, kind: input, shape index: {}]   ;;  %s1359_s3 = inlined_call_operand.vmem [shape: f32[1,128], index: 3, kind: input, shape index: {}]   ;;  %s1360_s4 = inlined_call_operand.hbm [shape: f32[8,128], index: 4, kind: output, shape index: {}]  }
   0x1   :  { %10 = vsyncpa [#allocation7], 0  ;;  %s27_s17 = sshll.u32 %s1357_s1, 4  ;;  %s28_s17 = int_to_ptr.hbm [resolvable:$true] %s27_s17 }
   0x2   :  { %11 = vsyncpa [#allocation5], 0  ;;  %s1310_s18 = smov [#allocation6]   ;;  %s17_s22 = sshll.u32 %s1356_s0, 4  ;;  %s18_s22 = int_to_ptr.hbm [resolvable:$true] %s17_s22 }
   0x3   :  { %s29_s19 = sshll.u32 %s1310_s18, 4  ;;  %s1311_s23 = smov 64   ;;  %s30_s19 = int_to_ptr.vmem [resolvable:$true] %s29_s19 }
   0x4   :  { %s1312_s24 = smov 4   ;;  %s1313_s25 = smov [#allocation3]  }
   0x5   :  { %35 = dma.hbm_to_vmem [thread:$0]  %s28_s17, 8192, %s30_s19, [#allocation7], %s1311_s23, %s1311_s23, %s1312_s24  }
   0x6   :  { %s19_s26 = sshll.u32 %s1313_s25, 4  ;;  %s40_s29 = sshll.u32 %s1358_s2, 4  ;;  %s20_s26 = int_to_ptr.vmem [resolvable:$true] %s19_s26  ;;  %s41_s29 = int_to_ptr.hbm [resolvable:$true] %s40_s29 }
   0x7   :  { %22 = dma.hbm_to_vmem [thread:$0]  %s18_s22, 512, %s20_s26, [#allocation4]  }
   0x8   :  { %s1314_s1 = smov [#allocation8]  }
   0x9   :  { %s42_s30 = sshll.u32 %s1314_s1, 4  ;;  %s43_s30 = int_to_ptr.vmem [resolvable:$true] %s42_s30 }
   0xa   :  { %48 = dma.hbm_to_vmem [thread:$0]  %s41_s29, 1024, %s43_s30, [#allocation7], %s1311_s23, %s1311_s23, %s1312_s24  }
   0xb   :  { %1304 = dma.done.wait [#allocation4], 512  }
   0xc   :  { %1305 = vsyncadd [#allocation4], 4294966784 }
   0xd   :  { %1306 = dma.done.wait [#allocation7], 9216  }
   0xe   :  { %1307 = vsyncadd [#allocation7], 4294958080  ;;  %v1134_v0 = vld [vmem:[#allocation6 + $0x38] sm:$0xff]  ;;  %v1133_v4 = vld [vmem:[#allocation6 + $0x30] sm:$0xff]  ;;  %s1315_s5 = smov [#allocation9]   ;;  %s828_s9 = sshll.u32 %s1360_s4, 4  ;;  %s829_s9 = int_to_ptr.hbm [resolvable:$true] %s828_s9 }
   0xf   :  { %v1142_v1 = vld [vmem:[#allocation6 + $0x78] sm:$0xff]  ;;  %613 = vmatpush.bf16.msra.mxu0 %v1134_v0  ;;  %v1141_v5 = vld [vmem:[#allocation6 + $0x70] sm:$0xff]  ;;  %v1132_v8 = vld [vmem:[#allocation6 + $0x28] sm:$0xff]  ;;  %s826_s6 = sshll.u32 %s1315_s5, 4  ;;  %s827_s6 = int_to_ptr.vmem [resolvable:$true] %s826_s6 }
  0x10   :  { %v1150_v2 = vld [vmem:[#allocation6 + $0xb8] sm:$0xff]  ;;  %626 = vmatpush.bf16.msra.mxu1 %v1142_v1  ;;  %v1149_v6 = vld [vmem:[#allocation6 + $0xb0] sm:$0xff]  ;;  %v1140_v9 = vld [vmem:[#allocation6 + $0x68] sm:$0xff] }
  0x11   :  { %v1158_v3 = vld [vmem:[#allocation6 + $0xf8] sm:$0xff]  ;;  %639 = vmatpush.bf16.msra.mxu2 %v1150_v2  ;;  %v1157_v7 = vld [vmem:[#allocation6 + $0xf0] sm:$0xff]  ;;  %v1148_v10 = vld [vmem:[#allocation6 + $0xa8] sm:$0xff] }
  0x12   :  { %652 = vmatpush.bf16.msra.mxu3 %v1158_v3  ;;  %v1156_v11 = vld [vmem:[#allocation6 + $0xe8] sm:$0xff]  ;;  %v1131_v12 = vld [vmem:[#allocation6 + $0x20] sm:$0xff]  ;;  %v1130_v16 = vld [vmem:[#allocation6 + $0x18] sm:$0xff] }
  0x13   :  { %614 = vmatpush.bf16.msra.mxu0 %v1133_v4  ;;  %v1139_v13 = vld [vmem:[#allocation6 + $0x60] sm:$0xff]  ;;  %v1138_v17 = vld [vmem:[#allocation6 + $0x58] sm:$0xff]  ;;  %v1129_v20 = vld [vmem:[#allocation6 + $0x10] sm:$0xff] }
  0x14   :  { %627 = vmatpush.bf16.msra.mxu1 %v1141_v5  ;;  %v1147_v14 = vld [vmem:[#allocation6 + $0xa0] sm:$0xff]  ;;  %v1146_v18 = vld [vmem:[#allocation6 + $0x98] sm:$0xff]  ;;  %v1137_v21 = vld [vmem:[#allocation6 + $0x50] sm:$0xff] }
  0x15   :  { %640 = vmatpush.bf16.msra.mxu2 %v1149_v6  ;;  %v1155_v15 = vld [vmem:[#allocation6 + $0xe0] sm:$0xff]  ;;  %v1154_v19 = vld [vmem:[#allocation6 + $0xd8] sm:$0xff]  ;;  %v1145_v22 = vld [vmem:[#allocation6 + $0x90] sm:$0xff] }
  0x16   :  { %653 = vmatpush.bf16.msra.mxu3 %v1157_v7  ;;  %v1153_v23 = vld [vmem:[#allocation6 + $0xd0] sm:$0xff]  ;;  %v1128_v24 = vld [vmem:[#allocation6 + $0x8] sm:$0xff]  ;;  %v69_v29 = vld [vmem:[#allocation3] sm:$0xff] }
  0x17   :  { %615 = vmatpush.bf16.msra.mxu0 %v1132_v8  ;;  %v1136_v25 = vld [vmem:[#allocation6 + $0x48] sm:$0xff]  ;;  %v1127_v30 = vld [vmem:[#allocation6] sm:$0xff]  ;;  %v205_v33 = vunpack.c.l.b16 %v69_v29  ;;  %v206_v37 = vunpack.c.h.b16 %v69_v29  ;;  %v1166_v38 = vld [vmem:[#allocation6 + $0x138] sm:$0xff] }
  0x18   :  { %628 = vmatpush.bf16.msra.mxu1 %v1140_v9  ;;  %v1144_v26 = vld [vmem:[#allocation6 + $0x88] sm:$0xff]  ;;  %v1135_v31 = vld [vmem:[#allocation6 + $0x40] sm:$0xff]  ;;  %v1174_v39 = vld [vmem:[#allocation6 + $0x178] sm:$0xff] }
  0x19   :  { %641 = vmatpush.bf16.msra.mxu2 %v1148_v10  ;;  %v1152_v27 = vld [vmem:[#allocation6 + $0xc8] sm:$0xff]  ;;  %v1143_v34 = vld [vmem:[#allocation6 + $0x80] sm:$0xff]  ;;  %v1182_v40 = vld [vmem:[#allocation6 + $0x1b8] sm:$0xff]  ;;  %v213_v43 = vpack.c.b16 %v205_v33, %v205_v33  ;;  %v214_v45 = vpack.c.b16 %v206_v37, %v206_v37 }
  0x1a   :  { %654 = vmatpush.bf16.msra.mxu3 %v1156_v11  ;;  %v70_v28 = vld [vmem:[#allocation3 + $0x8] sm:$0xff]  ;;  %v1151_v35 = vld [vmem:[#allocation6 + $0xc0] sm:$0xff]  ;;  %v1190_v41 = vld [vmem:[#allocation6 + $0x1f8] sm:$0xff] }
  0x1b   :  { %616 = vmatpush.bf16.msra.mxu0 %v1131_v12  ;;  %v207_v32 = vunpack.c.l.b16 %v70_v28  ;;  %v208_v36 = vunpack.c.h.b16 %v70_v28  ;;  %v1165_v46 = vld [vmem:[#allocation6 + $0x130] sm:$0xff]  ;;  %v1164_v50 = vld [vmem:[#allocation6 + $0x128] sm:$0xff]  ;;  %v1163_v54 = vld [vmem:[#allocation6 + $0x120] sm:$0xff] }
  0x1c   :  { %629 = vmatpush.bf16.msra.mxu1 %v1139_v13  ;;  %v1173_v47 = vld [vmem:[#allocation6 + $0x170] sm:$0xff]  ;;  %v1172_v51 = vld [vmem:[#allocation6 + $0x168] sm:$0xff]  ;;  %v1171_v55 = vld [vmem:[#allocation6 + $0x160] sm:$0xff] }
  0x1d   :  { %642 = vmatpush.bf16.msra.mxu2 %v1147_v14  ;;  %v215_v42 = vpack.c.b16 %v207_v32, %v207_v32  ;;  %v216_v44 = vpack.c.b16 %v208_v36, %v208_v36  ;;  %v1181_v48 = vld [vmem:[#allocation6 + $0x1b0] sm:$0xff]  ;;  %v1180_v52 = vld [vmem:[#allocation6 + $0x1a8] sm:$0xff]  ;;  %v1179_v56 = vld [vmem:[#allocation6 + $0x1a0] sm:$0xff] }
  0x1e   :  { %655 = vmatpush.bf16.msra.mxu3 %v1155_v15  ;;  %v1189_v49 = vld [vmem:[#allocation6 + $0x1f0] sm:$0xff]  ;;  %v1188_v53 = vld [vmem:[#allocation6 + $0x1e8] sm:$0xff]  ;;  %v1187_v57 = vld [vmem:[#allocation6 + $0x1e0] sm:$0xff] }
  0x1f   :  { %617 = vmatpush.bf16.msra.mxu0 %v1130_v16  ;;  %v1162_v58 = vld [vmem:[#allocation6 + $0x118] sm:$0xff]  ;;  %v1161_v62 = vld [vmem:[#allocation6 + $0x110] sm:$0xff]  ;;  %v1160_v2 = vld [vmem:[#allocation6 + $0x108] sm:$0xff] }
  0x20   :  { %630 = vmatpush.bf16.msra.mxu1 %v1138_v17  ;;  %v1170_v59 = vld [vmem:[#allocation6 + $0x158] sm:$0xff]  ;;  %v1169_v63 = vld [vmem:[#allocation6 + $0x150] sm:$0xff]  ;;  %v1168_v3 = vld [vmem:[#allocation6 + $0x148] sm:$0xff] }
  0x21   :  { %643 = vmatpush.bf16.msra.mxu2 %v1146_v18  ;;  %v1178_v60 = vld [vmem:[#allocation6 + $0x198] sm:$0xff]  ;;  %v1177_v0 = vld [vmem:[#allocation6 + $0x190] sm:$0xff]  ;;  %v1176_v5 = vld [vmem:[#allocation6 + $0x188] sm:$0xff] }
  0x22   :  { %656 = vmatpush.bf16.msra.mxu3 %v1154_v19  ;;  %v1186_v61 = vld [vmem:[#allocation6 + $0x1d8] sm:$0xff]  ;;  %v1185_v1 = vld [vmem:[#allocation6 + $0x1d0] sm:$0xff]  ;;  %v1184_v6 = vld [vmem:[#allocation6 + $0x1c8] sm:$0xff] }
  0x23   :  { %618 = vmatpush.bf16.msra.mxu0 %v1129_v20  ;;  %v71_v4 = vld [vmem:[#allocation3 + $0x10] sm:$0xff]  ;;  %v72_v7 = vld [vmem:[#allocation3 + $0x18] sm:$0xff]  ;;  %v1159_v10 = vld [vmem:[#allocation6 + $0x100] sm:$0xff] }
  0x24   :  { %631 = vmatpush.bf16.msra.mxu1 %v1137_v21  ;;  %v209_v8 = vunpack.c.l.b16 %v71_v4  ;;  %v210_v9 = vunpack.c.h.b16 %v71_v4  ;;  %v1167_v11 = vld [vmem:[#allocation6 + $0x140] sm:$0xff]  ;;  %v211_v12 = vunpack.c.l.b16 %v72_v7  ;;  %v212_v13 = vunpack.c.h.b16 %v72_v7  ;;  %v1197_v28 = vld [vmem:[#allocation8 + $0x30] sm:$0xff] }
  0x25   :  { %644 = vmatpush.bf16.msra.mxu2 %v1145_v22  ;;  %v1175_v14 = vld [vmem:[#allocation6 + $0x180] sm:$0xff] }
  0x26   :  { %657 = vmatpush.bf16.msra.mxu3 %v1153_v23  ;;  %v1183_v15 = vld [vmem:[#allocation6 + $0x1c0] sm:$0xff]  ;;  %v217_v16 = vpack.c.b16 %v209_v8, %v209_v8  ;;  %v218_v17 = vpack.c.b16 %v210_v9, %v210_v9  ;;  %v219_v18 = vpack.c.b16 %v211_v12, %v211_v12  ;;  %v220_v19 = vpack.c.b16 %v212_v13, %v212_v13 }
  0x27   :  { %619 = vmatpush.bf16.msra.mxu0 %v1128_v24 }
  0x28   :  { %632 = vmatpush.bf16.msra.mxu1 %v1136_v25 }
  0x29   :  { %645 = vmatpush.bf16.msra.mxu2 %v1144_v26  ;;  %v1198_v26 = vld [vmem:[#allocation8 + $0x38] sm:$0xff] }
  0x2a   :  { %658 = vmatpush.bf16.msra.mxu3 %v1152_v27 }
  0x2b   :  { %620 = vmatpush.bf16.msra.mxu0 %v1127_v30 }
  0x2c   :  { %633 = vmatpush.bf16.msra.mxu1 %v1135_v31 }
  0x2d   :  { %646 = vmatpush.bf16.msra.mxu2 %v1143_v34 }
  0x2e   :  { %659 = vmatpush.bf16.msra.mxu3 %v1151_v35  ;;  %621 = vmatmul.bf16.vlgmr.msra.gmra.mxu0 %v213_v43 }
  0x2f   :  { %665 = vmatpush.bf16.msrb.mxu0 %v1166_v38  ;;  %634 = vmatmul.bf16.vlgmr.msra.gmra.mxu1 %v214_v45 }
  0x30   :  { %678 = vmatpush.bf16.msrb.mxu1 %v1174_v39  ;;  %647 = vmatmul.bf16.vlgmr.msra.gmra.mxu2 %v215_v42 }
  0x31   :  { %691 = vmatpush.bf16.msrb.mxu2 %v1182_v40  ;;  %660 = vmatmul.bf16.vlgmr.msra.gmra.mxu3 %v216_v44 }
  0x32   :  { %704 = vmatpush.bf16.msrb.mxu3 %v1190_v41 }
  0x33   :  { %666 = vmatpush.bf16.msrb.mxu0 %v1165_v46  ;;  %v1196_v46 = vld [vmem:[#allocation8 + $0x28] sm:$0xff] }
  0x34   :  { %679 = vmatpush.bf16.msrb.mxu1 %v1173_v47  ;;  %v1195_v47 = vld [vmem:[#allocation8 + $0x20] sm:$0xff] }
  0x35   :  { %692 = vmatpush.bf16.msrb.mxu2 %v1181_v48  ;;  %v1194_v48 = vld [vmem:[#allocation8 + $0x18] sm:$0xff] }
  0x36   :  { %705 = vmatpush.bf16.msrb.mxu3 %v1189_v49  ;;  %v1193_v49 = vld [vmem:[#allocation8 + $0x10] sm:$0xff] }
  0x37   :  { %667 = vmatpush.bf16.msrb.mxu0 %v1164_v50  ;;  %v1192_v50 = vld [vmem:[#allocation8 + $0x8] sm:$0xff] }
  0x38   :  { %680 = vmatpush.bf16.msrb.mxu1 %v1172_v51  ;;  %v1191_v51 = vld [vmem:[#allocation8] sm:$0xff] }
  0x39   :  { %693 = vmatpush.bf16.msrb.mxu2 %v1180_v52 }
  0x3a   :  { %706 = vmatpush.bf16.msrb.mxu3 %v1188_v53 }
  0x3b   :  { %668 = vmatpush.bf16.msrb.mxu0 %v1163_v54 }
  0x3c   :  { %681 = vmatpush.bf16.msrb.mxu1 %v1171_v55 }
  0x3d   :  { %694 = vmatpush.bf16.msrb.mxu2 %v1179_v56 }
  0x3e   :  { %707 = vmatpush.bf16.msrb.mxu3 %v1187_v57 }
  0x3f   :  { %669 = vmatpush.bf16.msrb.mxu0 %v1162_v58 }
  0x40   :  { %682 = vmatpush.bf16.msrb.mxu1 %v1170_v59 }
  0x41   :  { %695 = vmatpush.bf16.msrb.mxu2 %v1178_v60 }
  0x42   :  { %708 = vmatpush.bf16.msrb.mxu3 %v1186_v61 }
  0x43   :  { %670 = vmatpush.bf16.msrb.mxu0 %v1161_v62 }
  0x44   :  { %683 = vmatpush.bf16.msrb.mxu1 %v1169_v63  ;;  %v1205_v63 = vld [vmem:[%s1359_s3] ss:$0 sm:$0xff] }
  0x45   :  { %696 = vmatpush.bf16.msrb.mxu2 %v1177_v0 }
  0x46   :  { %709 = vmatpush.bf16.msrb.mxu3 %v1185_v1 }
  0x47   :  { %671 = vmatpush.bf16.msrb.mxu0 %v1160_v2 }
  0x48   :  { %684 = vmatpush.bf16.msrb.mxu1 %v1168_v3 }
  0x49   :  { %697 = vmatpush.bf16.msrb.mxu2 %v1176_v5 }
  0x4a   :  { %710 = vmatpush.bf16.msrb.mxu3 %v1184_v6 }
  0x4b   :  { %672 = vmatpush.bf16.msrb.mxu0 %v1159_v10 }
  0x4c   :  { %685 = vmatpush.bf16.msrb.mxu1 %v1167_v11 }
  0x4d   :  { %698 = vmatpush.bf16.msrb.mxu2 %v1175_v14 }
  0x4e   :  { %711 = vmatpush.bf16.msrb.mxu3 %v1183_v15  ;;  %673 = vmatmul.bf16.vlgmr.msrb.gmra.mxu0 %v217_v16 }
  0x4f   :  { %686 = vmatmul.bf16.vlgmr.msrb.gmra.mxu1 %v218_v17  ;;  %807 = vmatpush.bf16.msra.mxu0 %v1198_v26 }
  0x50   :  { %699 = vmatmul.bf16.vlgmr.msrb.gmra.mxu2 %v219_v18 }
  0x51   :  { %712 = vmatmul.bf16.vlgmr.msrb.gmra.mxu3 %v220_v19 }
  0x53   :  { %808 = vmatpush.bf16.msra.mxu0 %v1197_v28 }
  0x57   :  { %809 = vmatpush.bf16.msra.mxu0 %v1196_v46 }
  0x5b   :  { %810 = vmatpush.bf16.msra.mxu0 %v1195_v47 }
  0x5f   :  { %811 = vmatpush.bf16.msra.mxu0 %v1194_v48 }
  0x63   :  { %812 = vmatpush.bf16.msra.mxu0 %v1193_v49 }
  0x67   :  { %813 = vmatpush.bf16.msra.mxu0 %v1192_v50 }
  0x6b   :  { %814 = vmatpush.bf16.msra.mxu0 %v1191_v51 }
  0xab   :  { %v622_v20 = vpop.f32.mrf.mxu0 }
  0xac   :  { %v635_v21 = vpop.f32.mrf.mxu1 }
  0xad   :  { %v636_v30 = vadd.f32 %v635_v21, %v622_v20 }
  0xb3   :  { %v648_v22 = vpop.f32.mrf.mxu2  ;;  %v624_v24 = vpop.f32.mrf.mxu0 }
  0xb4   :  { %v661_v23 = vpop.f32.mrf.mxu3  ;;  %v637_v25 = vpop.f32.mrf.mxu1  ;;  %v649_v31 = vadd.f32 %v648_v22, %v636_v30 }
  0xb6   :  { %v662_v32 = vadd.f32 %v661_v23, %v649_v31 }
  0xbb   :  { %v650_v27 = vpop.f32.mrf.mxu2 }
  0xbc   :  { %v663_v29 = vpop.f32.mrf.mxu3 }
  0xcb   :  { %v674_v33 = vpop.f32.mrf.mxu0 }
  0xcc   :  { %v687_v34 = vpop.f32.mrf.mxu1  ;;  %v675_v35 = vadd.f32 %v674_v33, %v662_v32 }
  0xce   :  { %v688_v36 = vadd.f32 %v687_v34, %v675_v35 }
  0xd3   :  { %v700_v37 = vpop.f32.mrf.mxu2  ;;  %v676_v40 = vpop.f32.mrf.mxu0 }
  0xd4   :  { %v713_v38 = vpop.f32.mrf.mxu3  ;;  %v701_v39 = vadd.f32 %v700_v37, %v688_v36  ;;  %v689_v41 = vpop.f32.mrf.mxu1 }
  0xd6   :  { %v714_v42 = vadd.f32 %v713_v38, %v701_v39 }
  0xd8   :  { %v723_v43 = vmul.f32 %v714_v42, %v714_v42 }
  0xda   :  { %724 = vadd.xlane.f32.xlu0 %v723_v43 }
  0xdb   :  { %v702_v44 = vpop.f32.mrf.mxu2 }
  0xdc   :  { %v715_v45 = vpop.f32.mrf.mxu3 }
 0x14d   :  { %v725_v52 = vpop.xlane.xlu0 %724 }
 0x14e   :  { %v726_v53 = vmax.f32 %v725_v52, 1.2e-38 }
 0x150   :  { %1206 = vrsqrt.f32 %v726_v53  ;;  %vm733_vm1 = vweird.f32 %v726_v53 }
 0x156   :  { %v1207_v54 = vpop.eup %1206 }
 0x157   :  { %v728_v55 = vmul.f32 %v1207_v54, %v726_v53  ;;  %vm734_vm0 = vweird.f32 %v1207_v54 }
 0x158   :  { %vm735_vm2 = vmor %vm733_vm1, %vm734_vm0 }
 0x159   :  { %v729_v56 = vmul.f32 %v1207_v54, %v728_v55 }
 0x15b   :  { %v730_v57 = vmul.f32 0.5, %v729_v56 }
 0x15d   :  { %v731_v58 = vsub.f32 1.5, %v730_v57 }
 0x15f   :  { %v732_v59 = vmul.f32 %v1207_v54, %v731_v58 }
 0x161   :  { %v736_v60 = vsel %vm735_vm2, %v1207_v54, %v732_v59 }
 0x162   :  { %v737_v61 = vmul.f32 %v736_v60, %v714_v42 }
 0x164   :  { %v738_v62 = vpack.c.bf16 %v737_v61, %v737_v61 }
 0x166   :  { %815 = vmatmul.bf16.vlgmr.msra.gmra.mxu0 %v738_v62 }
 0x1e3   :  { %v816_v0 = vpop.f32.mrf.mxu0 }
 0x1e4   :  { %v817_v1 = vadd.f32 %v1205_v63, %v816_v0 }
 0x1e6   :  { %820 = vst [vmem:[#allocation9] sm:$0xff] %v817_v1 }
 0x1e7   :  { %831 = dma.vmem_to_hbm [thread:$0]  %s827_s6, 128, %s829_s9, [#allocation5]  }
 0x1eb   :  { %v818_v2 = vpop.f32.mrf.mxu0 }
 0x1ec   :  { %1308 = dma.done.wait [#allocation5], 128  }
 0x1ed   :  { %1309 = vsyncadd [#allocation5], 4294967168 }
 0x1ee   :  { %836 = vsyncpa [#allocation4], 1 }
 0x1ef   :  { %837 = vsyncpa [#allocation7], 1 }
 0x1f0   :  { %838 = vsyncpa [#allocation5], 1 }

</bundles_post_ra>
